<compile_context>
chip_gen: v7x
topology: tpu7x:2x2x1
jax: 0.10.0
libtpu: 0.0.40
codegen_flags: <defaults>
</compile_context>

<pallas_src>
import math

import jax
import jax.numpy as jnp
import numpy as np
from jax.experimental import pallas as pl
from jax.experimental.pallas import tpu as pltpu

FIELD_SIZE = 4
FEATURE_SIZES = [10, 20, 30, 40]          # sum = 100 vocabulary rows
EMB_SIZE = 4
DEEP_LAYERS = [12, 8]
BN_EPS = 1e-5

VOCAB_PAD = 128                           # vocab padded to one lane width
FBLK = 8                                  # rows per field in the gathered block
# Gathered-row layout inside each per-field 8-row block:
#   row 0      : first-order weight
#   rows 1..E  : embedding dims
#   row 5      : sum_e emb^2          (FM second-order helper)
#   row 6      : constant 1.0         (carries the folded biases, field 0)
#   row 7      : zero padding


def deepfm_kernel(xt_ref, tab_ref, afm_ref, w1_ref, w2_ref, out_ref):
    # TODO(synk): dropout layers are eval-mode identities (no RNG masking).
    tb = xt_ref.shape[-1]
    xi = xt_ref[...]                                            # (F, tb) int32
    tab = tab_ref[...]                                          # (8, 128)

    # ---- In-kernel embedding gather: per-field one-hot (VPU) @ table (MXU).
    vocab_iota = jax.lax.broadcasted_iota(jnp.int32, (VOCAB_PAD, tb), 0)
    blocks = []
    for f in range(FIELD_SIZE):
        onehot = (vocab_iota == xi[f:f + 1, :]).astype(jnp.float32)  # (128,tb)
        blocks.append(jnp.dot(tab, onehot,
                              preferred_element_type=jnp.float32))   # (8, tb)
    res = jnp.concatenate(blocks, axis=0)                       # (F*8, tb)

    # ---- FM head: one constant matmul gives
    #        rows 0..7  : fm1_sum - 0.5*sum_sq + global_bias   (linear part)
    #        rows 8..15 : sqrt(0.5) * sum_emb                  (squared below)
    rfm = jnp.dot(afm_ref[...], res, preferred_element_type=jnp.float32)
    sq = rfm[FBLK:2 * FBLK, :]
    fm = jnp.sum(rfm[0:FBLK, :] + sq * sq, axis=0, keepdims=True)   # (1, tb)

    # ---- Deep MLP, batch on lanes; BN and biases folded into w1/w2.
    h = jnp.maximum(jnp.dot(w1_ref[...], res,
                            preferred_element_type=jnp.float32), 0.0)  # (16,tb)
    h = jnp.maximum(jnp.dot(w2_ref[...], h,
                            preferred_element_type=jnp.float32), 0.0)  # (8, tb)
    deep = jnp.sum(h, axis=0, keepdims=True)                    # (1, tb)

    out_ref[...] = jax.nn.sigmoid(fm + deep)                    # lane-dense


def init_params(key):
    vocab = sum(FEATURE_SIZES)
    F, E = FIELD_SIZE, EMB_SIZE
    D1, D2 = DEEP_LAYERS
    stdv = math.sqrt(1.0 / len(FEATURE_SIZES))
    ks = jax.random.split(key, 16)

    def unif(k, shape, bound):
        return jax.random.uniform(k, shape, jnp.float32, -bound, bound)

    return dict(
        fm_first_w=stdv * jax.random.normal(ks[0], (vocab, 1), jnp.float32),
        fm_second_w=stdv * jax.random.normal(ks[1], (vocab, E), jnp.float32),
        w1=unif(ks[2], (F * E, D1), 1.0 / math.sqrt(F * E)),
        b1=unif(ks[3], (D1,), 1.0 / math.sqrt(F * E)),
        g1=1.0 + 0.1 * jax.random.normal(ks[4], (D1,), jnp.float32),
        be1=0.1 * jax.random.normal(ks[5], (D1,), jnp.float32),
        m1=0.1 * jax.random.normal(ks[6], (D1,), jnp.float32),
        v1=1.0 + 0.5 * jax.random.uniform(ks[7], (D1,), jnp.float32),
        w2=unif(ks[8], (D1, D2), 1.0 / math.sqrt(D1)),
        b2=unif(ks[9], (D2,), 1.0 / math.sqrt(D1)),
        g2=1.0 + 0.1 * jax.random.normal(ks[10], (D2,), jnp.float32),
        be2=0.1 * jax.random.normal(ks[11], (D2,), jnp.float32),
        m2=0.1 * jax.random.normal(ks[12], (D2,), jnp.float32),
        v2=1.0 + 0.5 * jax.random.uniform(ks[13], (D2,), jnp.float32),
        bias=jax.random.normal(ks[14], (1,), jnp.float32),
    )


def _round_up(x, m):
    return ((x + m - 1) // m) * m


def _fold_bn(w, b, g, be, m, v):
    scale = g * jax.lax.rsqrt(v + BN_EPS)
    return w * scale[None, :], (b - m) * scale + be


def _build_consts(p):
    """Build the constant matrices consumed by the kernel."""
    F, E, V = FIELD_SIZE, EMB_SIZE, sum(FEATURE_SIZES)
    D1, D2 = DEEP_LAYERS
    D1p = _round_up(D1 + 1, 8)       # keep one spare row for the constant-1
    D2p = _round_up(D2, 8)
    CONST_COL = 6                    # field-0 constant-1 row inside `res`

    w1f, b1f = _fold_bn(p["w1"], p["b1"], p["g1"], p["be1"], p["m1"], p["v1"])
    w2f, b2f = _fold_bn(p["w2"], p["b2"], p["g2"], p["be2"], p["m2"], p["v2"])

    # Per-field gather table (8, 128).
    tab = jnp.zeros((FBLK, VOCAB_PAD), jnp.float32)
    tab = tab.at[0, :V].set(p["fm_first_w"][:, 0])
    tab = tab.at[1:1 + E, :V].set(p["fm_second_w"].T)
    tab = tab.at[5, :V].set(jnp.sum(p["fm_second_w"] ** 2, axis=1))
    tab = tab.at[6, :].set(1.0)

    # FM head matrix (16, F*8):
    #   row 0      : +first_w(f), -0.5*sumsq(f) for every field, +global bias
    #   rows 8..11 : sqrt(0.5) * emb_e(f)  summed over fields (squared in-kernel)
    afm = np.zeros((2 * FBLK, F * FBLK), np.float32)
    for f in range(F):
        afm[0, f * FBLK + 0] = 1.0
        afm[0, f * FBLK + 5] = -0.5
        for e in range(E):
            afm[FBLK + e, f * FBLK + 1 + e] = math.sqrt(0.5)
    afm = jnp.asarray(afm).at[0, CONST_COL].set(p["bias"][0])

    # Deep layer 1 remapped onto the res layout; b1 rides the constant row,
    # and row D1p-1 becomes a constant-1 row of h1 to carry b2.
    w1k = jnp.zeros((D1p, F * FBLK), jnp.float32)
    for f in range(F):
        w1k = w1k.at[:D1, f * FBLK + 1:f * FBLK + 1 + E].set(
            w1f[f * E:(f + 1) * E, :].T)
    w1k = w1k.at[:D1, CONST_COL].set(b1f)
    w1k = w1k.at[D1p - 1, CONST_COL].set(1.0)

    # Deep layer 2: (D2p, D1p), b2 on the constant column D1p-1.
    w2k = jnp.zeros((D2p, D1p), jnp.float32)
    w2k = w2k.at[:D2, :D1].set(w2f.T)
    w2k = w2k.at[:D2, D1p - 1].set(b2f)
    return tab, afm, w1k, w2k


def deepfm_forward(x_idx, p, *, tile_b=8192):
    """Fused DeepFM forward.  tile_b = max batch rows per grid step (x128)."""
    B, F = x_idx.shape
    assert F == FIELD_SIZE
    assert tile_b % 128 == 0 and tile_b > 0

    # Tile choice: big tiles amortize the ~0.35us/step grid overhead, but keep
    # >=2 "parallel" grid steps when the batch allows it (v7x has 2 cores).
    half = _round_up(max((B + 1) // 2, 1), 128)
    tb = min(tile_b, half)
    Bp = _round_up(B, tb)

    xt = x_idx.astype(jnp.int32).T                      # (F, B): batch on lanes
    if Bp != B:
        xt = jnp.pad(xt, ((0, 0), (0, Bp - B)))         # pad rows use index 0

    tab, afm, w1k, w2k = _build_consts(p)

    const = lambda a: pl.BlockSpec(a.shape, lambda i: (0, 0))
    out = pl.pallas_call(
        deepfm_kernel,
        out_shape=jax.ShapeDtypeStruct((1, Bp), jnp.float32),
        grid_spec=pltpu.PrefetchScalarGridSpec(
            num_scalar_prefetch=0,
            grid=(Bp // tb,),
            in_specs=[
                pl.BlockSpec((FIELD_SIZE, tb), lambda i: (0, i)),
                const(tab), const(afm), const(w1k), const(w2k),
            ],
            out_specs=pl.BlockSpec((1, tb), lambda i: (0, i)),
        ),
        compiler_params=pltpu.CompilerParams(
            dimension_semantics=("parallel",),
            # one-hot intermediates live in VMEM; 40 MiB is safe on
            # v5e/v6e (128 MiB physical) and v7x (64 MiB physical).
            vmem_limit_bytes=40 * 1024 * 1024),
    )(xt, tab, afm, w1k, w2k)
    return out[0, :B]


def deepfm_ref(x_idx, p):
    B, F = x_idx.shape
    E = EMB_SIZE
    flat = x_idx.reshape(-1)
    fm_first = jnp.take(p["fm_first_w"], flat, axis=0).reshape(B, F)
    fm_sec = jnp.take(p["fm_second_w"], flat, axis=0).reshape(B, F, E)
    sum_emb = jnp.sum(fm_sec, axis=1)
    fm_second = 0.5 * (sum_emb * sum_emb - jnp.sum(fm_sec * fm_sec, axis=1))
    h = fm_sec.reshape(B, F * E) @ p["w1"] + p["b1"]
    h = p["g1"] * (h - p["m1"]) / jnp.sqrt(p["v1"] + BN_EPS) + p["be1"]
    h = jnp.maximum(h, 0.0)
    h = h @ p["w2"] + p["b2"]
    h = p["g2"] * (h - p["m2"]) / jnp.sqrt(p["v2"] + BN_EPS) + p["be2"]
    h = jnp.maximum(h, 0.0)
    total = (jnp.sum(fm_first, 1) + jnp.sum(fm_second, 1)
             + jnp.sum(h, 1) + p["bias"])
    return jax.nn.sigmoid(total)


if __name__ == "__main__":
    key = jax.random.PRNGKey(0)
    pkey, xkey = jax.random.split(key)
    params = init_params(pkey)

    # Small deterministic example (single 128-wide tile, padded batch).
    B = 16
    x = jax.random.randint(xkey, (B, FIELD_SIZE), 0, sum(FEATURE_SIZES),
                           dtype=jnp.int32)
    out = jax.block_until_ready(deepfm_forward(x, params))
    ref = deepfm_ref(x, params)
    assert out.shape == (B,)
    # 1e-4 tolerance allows for MXU f32 multi-pass / reordering rounding.
    assert jnp.allclose(out, ref, atol=1e-4, rtol=1e-4), (out, ref)

    # Multi-step grid + batch padding + multi-block lane-dense output.
    B2 = 300
    x2 = jax.random.randint(jax.random.PRNGKey(1), (B2, FIELD_SIZE), 0,
                            sum(FEATURE_SIZES), dtype=jnp.int32)
    out2 = jax.block_until_ready(deepfm_forward(x2, params, tile_b=128))
    ref2 = deepfm_ref(x2, params)
    assert out2.shape == (B2,)
    assert jnp.allclose(out2, ref2, atol=1e-4, rtol=1e-4), (out2, ref2)

    # Default tile path (auto-halved so the parallel axis keeps >=2 steps).
    out3 = jax.block_until_ready(deepfm_forward(x2, params))
    assert jnp.allclose(out3, ref2, atol=1e-4, rtol=1e-4), (out3, ref2)

    print("KERNEL_OK")
</pallas_src>

<mosaic_0001>
module attributes {stable_mosaic.version = 11 : i64} {
  func.func @deepfm_kernel(%arg0: i32, %arg1: memref<4x128xi32, #tpu.memory_space<vmem>>, %arg2: memref<8x128xf32, #tpu.memory_space<vmem>>, %arg3: memref<16x32xf32, #tpu.memory_space<vmem>>, %arg4: memref<16x32xf32, #tpu.memory_space<vmem>>, %arg5: memref<8x16xf32, #tpu.memory_space<vmem>>, %arg6: memref<1x128xf32, #tpu.memory_space<vmem>>) attributes {dimension_semantics = [#tpu.dimension_semantics<parallel>], iteration_bounds = array<i64: 1>, scalar_prefetch = 0 : i64, scratch_operands = 0 : i64, tpu.core_type = #tpu.core_type<tc>, window_params = [{transform_indices = @transform_0, window_bounds = array<i64: 4, 128>}, {pipeline_mode = #tpu.pipeline_mode<synchronous>, transform_indices = @transform_1, window_bounds = array<i64: 8, 128>}, {pipeline_mode = #tpu.pipeline_mode<synchronous>, transform_indices = @transform_2, window_bounds = array<i64: 16, 32>}, {pipeline_mode = #tpu.pipeline_mode<synchronous>, transform_indices = @transform_3, window_bounds = array<i64: 16, 32>}, {pipeline_mode = #tpu.pipeline_mode<synchronous>, transform_indices = @transform_4, window_bounds = array<i64: 8, 16>}, {transform_indices = @transform_5, window_bounds = array<i64: 1, 128>}]} {
    %c0 = arith.constant 0 : index
    %c0_0 = arith.constant 0 : index
    %0 = vector.load %arg1[%c0, %c0_0] : memref<4x128xi32, #tpu.memory_space<vmem>>, vector<4x128xi32>
    %c0_1 = arith.constant 0 : index
    %c0_2 = arith.constant 0 : index
    %1 = vector.load %arg2[%c0_1, %c0_2] : memref<8x128xf32, #tpu.memory_space<vmem>>, vector<8x128xf32>
    %2 = tpu.iota {dimensions = array<i32: 0>} : vector<128x128xi32>
    %3 = vector.extract_strided_slice %0 {offsets = [0, 0], sizes = [1, 128], strides = [1, 1]} : vector<4x128xi32> to vector<1x128xi32>
    %4 = vector.broadcast %3 : vector<1x128xi32> to vector<128x128xi32>
    %5 = arith.cmpi eq, %2, %4 : vector<128x128xi32>
    %6 = arith.extui %5 : vector<128x128xi1> to vector<128x128xi32>
    %7 = arith.sitofp %6 : vector<128x128xi32> to vector<128x128xf32>
    %cst = arith.constant dense<0.000000e+00> : vector<8x128xf32>
    %8 = tpu.matmul %1, %7, %cst {dimension_numbers = #tpu.dot_dimension_numbers<[1], [0], [0], [1], [0, 0, 1, 1], [], []>} : vector<8x128xf32>, vector<128x128xf32>, vector<8x128xf32> -> vector<8x128xf32>
    %9 = vector.extract_strided_slice %0 {offsets = [1, 0], sizes = [1, 128], strides = [1, 1]} : vector<4x128xi32> to vector<1x128xi32>
    %10 = vector.broadcast %9 : vector<1x128xi32> to vector<128x128xi32>
    %11 = arith.cmpi eq, %2, %10 : vector<128x128xi32>
    %12 = arith.extui %11 : vector<128x128xi1> to vector<128x128xi32>
    %13 = arith.sitofp %12 : vector<128x128xi32> to vector<128x128xf32>
    %cst_3 = arith.constant dense<0.000000e+00> : vector<8x128xf32>
    %14 = tpu.matmul %1, %13, %cst_3 {dimension_numbers = #tpu.dot_dimension_numbers<[1], [0], [0], [1], [0, 0, 1, 1], [], []>} : vector<8x128xf32>, vector<128x128xf32>, vector<8x128xf32> -> vector<8x128xf32>
    %15 = vector.extract_strided_slice %0 {offsets = [2, 0], sizes = [1, 128], strides = [1, 1]} : vector<4x128xi32> to vector<1x128xi32>
    %16 = vector.broadcast %15 : vector<1x128xi32> to vector<128x128xi32>
    %17 = arith.cmpi eq, %2, %16 : vector<128x128xi32>
    %18 = arith.extui %17 : vector<128x128xi1> to vector<128x128xi32>
    %19 = arith.sitofp %18 : vector<128x128xi32> to vector<128x128xf32>
    %cst_4 = arith.constant dense<0.000000e+00> : vector<8x128xf32>
    %20 = tpu.matmul %1, %19, %cst_4 {dimension_numbers = #tpu.dot_dimension_numbers<[1], [0], [0], [1], [0, 0, 1, 1], [], []>} : vector<8x128xf32>, vector<128x128xf32>, vector<8x128xf32> -> vector<8x128xf32>
    %21 = vector.extract_strided_slice %0 {offsets = [3, 0], sizes = [1, 128], strides = [1, 1]} : vector<4x128xi32> to vector<1x128xi32>
    %22 = vector.broadcast %21 : vector<1x128xi32> to vector<128x128xi32>
    %23 = arith.cmpi eq, %2, %22 : vector<128x128xi32>
    %24 = arith.extui %23 : vector<128x128xi1> to vector<128x128xi32>
    %25 = arith.sitofp %24 : vector<128x128xi32> to vector<128x128xf32>
    %cst_5 = arith.constant dense<0.000000e+00> : vector<8x128xf32>
    %26 = tpu.matmul %1, %25, %cst_5 {dimension_numbers = #tpu.dot_dimension_numbers<[1], [0], [0], [1], [0, 0, 1, 1], [], []>} : vector<8x128xf32>, vector<128x128xf32>, vector<8x128xf32> -> vector<8x128xf32>
    %27 = tpu.concatenate %8, %14, %20, %26 in 0 : vector<8x128xf32>, vector<8x128xf32>, vector<8x128xf32>, vector<8x128xf32> -> vector<32x128xf32>
    %c0_6 = arith.constant 0 : index
    %c0_7 = arith.constant 0 : index
    %28 = vector.load %arg3[%c0_6, %c0_7] : memref<16x32xf32, #tpu.memory_space<vmem>>, vector<16x32xf32>
    %cst_8 = arith.constant dense<0.000000e+00> : vector<16x128xf32>
    %29 = tpu.matmul %28, %27, %cst_8 {dimension_numbers = #tpu.dot_dimension_numbers<[1], [0], [0], [1], [0, 0, 1, 1], [], []>} : vector<16x32xf32>, vector<32x128xf32>, vector<16x128xf32> -> vector<16x128xf32>
    %30 = vector.extract_strided_slice %29 {offsets = [8, 0], sizes = [8, 128], strides = [1, 1]} : vector<16x128xf32> to vector<8x128xf32>
    %31 = vector.extract_strided_slice %29 {offsets = [0, 0], sizes = [8, 128], strides = [1, 1]} : vector<16x128xf32> to vector<8x128xf32>
    %32 = arith.mulf %30, %30 : vector<8x128xf32>
    %33 = arith.addf %31, %32 : vector<8x128xf32>
    %cst_9 = arith.constant dense<0.000000e+00> : vector<128xf32>
    %34 = vector.multi_reduction <add>, %33, %cst_9 [0] : vector<8x128xf32> to vector<128xf32>
    %35 = vector.shape_cast %34 : vector<128xf32> to vector<1x128xf32>
    %c0_10 = arith.constant 0 : index
    %c0_11 = arith.constant 0 : index
    %36 = vector.load %arg4[%c0_10, %c0_11] : memref<16x32xf32, #tpu.memory_space<vmem>>, vector<16x32xf32>
    %cst_12 = arith.constant dense<0.000000e+00> : vector<16x128xf32>
    %37 = tpu.matmul %36, %27, %cst_12 {dimension_numbers = #tpu.dot_dimension_numbers<[1], [0], [0], [1], [0, 0, 1, 1], [], []>} : vector<16x32xf32>, vector<32x128xf32>, vector<16x128xf32> -> vector<16x128xf32>
    %cst_13 = arith.constant 0.000000e+00 : f32
    %38 = vector.broadcast %cst_13 : f32 to vector<16x128xf32>
    %39 = arith.maximumf %37, %38 : vector<16x128xf32>
    %c0_14 = arith.constant 0 : index
    %c0_15 = arith.constant 0 : index
    %40 = vector.load %arg5[%c0_14, %c0_15] : memref<8x16xf32, #tpu.memory_space<vmem>>, vector<8x16xf32>
    %cst_16 = arith.constant dense<0.000000e+00> : vector<8x128xf32>
    %41 = tpu.matmul %40, %39, %cst_16 {dimension_numbers = #tpu.dot_dimension_numbers<[1], [0], [0], [1], [0, 0, 1, 1], [], []>} : vector<8x16xf32>, vector<16x128xf32>, vector<8x128xf32> -> vector<8x128xf32>
    %cst_17 = arith.constant 0.000000e+00 : f32
    %42 = vector.broadcast %cst_17 : f32 to vector<8x128xf32>
    %43 = arith.maximumf %41, %42 : vector<8x128xf32>
    %cst_18 = arith.constant dense<0.000000e+00> : vector<128xf32>
    %44 = vector.multi_reduction <add>, %43, %cst_18 [0] : vector<8x128xf32> to vector<128xf32>
    %45 = vector.shape_cast %44 : vector<128xf32> to vector<1x128xf32>
    %46 = arith.addf %35, %45 : vector<1x128xf32>
    %47 = arith.negf %46 : vector<1x128xf32>
    %48 = math.exp %47 : vector<1x128xf32>
    %cst_19 = arith.constant 1.000000e+00 : f32
    %49 = vector.broadcast %cst_19 : f32 to vector<1x128xf32>
    %50 = arith.addf %49, %48 : vector<1x128xf32>
    %51 = arith.divf %49, %50 : vector<1x128xf32>
    %c0_20 = arith.constant 0 : index
    %c0_21 = arith.constant 0 : index
    %52 = vector.load %arg6[%c0_20, %c0_21] : memref<1x128xf32, #tpu.memory_space<vmem>>, vector<1x128xf32>
    tpu.vector_store %arg6[%c0_20, %c0_21], %51 {strides = array<i32>} : memref<1x128xf32, #tpu.memory_space<vmem>>, vector<1x128xf32>,
    return
  }
  func.func @transform_0(%arg0: i32) -> (i32, i32) {
    %c0_i32 = arith.constant 0 : i32
    %c0_i32_0 = arith.constant 0 : i32
    return %c0_i32, %arg0 : i32, i32
  }
  func.func @transform_1(%arg0: i32) -> (i32, i32) {
    %c0_i32 = arith.constant 0 : i32
    %c0_i32_0 = arith.constant 0 : i32
    %c0_i32_1 = arith.constant 0 : i32
    return %c0_i32, %c0_i32_0 : i32, i32
  }
  func.func @transform_2(%arg0: i32) -> (i32, i32) {
    %c0_i32 = arith.constant 0 : i32
    %c0_i32_0 = arith.constant 0 : i32
    %c0_i32_1 = arith.constant 0 : i32
    return %c0_i32, %c0_i32_0 : i32, i32
  }
  func.func @transform_3(%arg0: i32) -> (i32, i32) {
    %c0_i32 = arith.constant 0 : i32
    %c0_i32_0 = arith.constant 0 : i32
    %c0_i32_1 = arith.constant 0 : i32
    return %c0_i32, %c0_i32_0 : i32, i32
  }
  func.func @transform_4(%arg0: i32) -> (i32, i32) {
    %c0_i32 = arith.constant 0 : i32
    %c0_i32_0 = arith.constant 0 : i32
    %c0_i32_1 = arith.constant 0 : i32
    return %c0_i32, %c0_i32_0 : i32, i32
  }
  func.func @transform_5(%arg0: i32) -> (i32, i32) {
    %c0_i32 = arith.constant 0 : i32
    %c0_i32_0 = arith.constant 0 : i32
    return %c0_i32, %arg0 : i32, i32
  }
}

</mosaic_0001>

<bundles_post_ra>
// kernel: tpu_custom_call.1
= control target key start
LH: loop header
LB: loop body
LE: loop exit
PB: predicated region body
PF: predicated region fallthrough
CT: control target
= control target key end

     0   :  { %10 = vsyncpa [#allocation3], 0  ;;  %s1879_s0 = inlined_call_operand.hbm [shape: s32[4,128], index: 0, kind: input, shape index: {}]   ;;  %s1880_s1 = inlined_call_operand.hbm [shape: f32[8,128], index: 1, kind: input, shape index: {}]   ;;  %s1881_s2 = inlined_call_operand.hbm [shape: f32[16,32], index: 2, kind: input, shape index: {}]   ;;  %s1882_s3 = inlined_call_operand.hbm [shape: f32[16,32], index: 3, kind: input, shape index: {}]   ;;  %s1883_s4 = inlined_call_operand.vmem [shape: f32[8,16], index: 4, kind: input, shape index: {}]   ;;  %s1884_s5 = inlined_call_operand.hbm [shape: f32[1,128], index: 5, kind: output, shape index: {}]  }
   0x1   :  { %11 = vsyncpa [#allocation6], 0 }
   0x2   :  { %12 = vsyncpa [#allocation9], 0 }
   0x3   :  { %13 = vsyncpa [#allocation4], 0  ;;  %s1497_s18 = smov [#allocation5]   ;;  %s1498_s20 = smov [#allocation2]  }
   0x4   :  { %s30_s19 = sshll.u32 %s1497_s18, 4  ;;  %s20_s21 = sshll.u32 %s1498_s20, 4  ;;  %s31_s19 = int_to_ptr.vmem [resolvable:$true] %s30_s19  ;;  %s21_s21 = int_to_ptr.vmem [resolvable:$true] %s20_s21 }
   0x5   :  { %s1379_s24 = scalar_lea.hbm %s1880_s1, 128 }
   0x6   :  { %p1380_p0 = scmp.ne.s32.totalorder %s1880_s1, %s1379_s24  ;;  %p1383_p1 = scmp.lt.u32.totalorder %s1379_s24, %s1880_s1 }
   0x8   :  { %p1385_p2 = pnand %p1383_p1, %p1380_p0 }
   0xa   :  { %1388 = shalt.err (!%p1385_p2)
}
   0xb   :  { %s1389_s29 = scalar_lea.vmem %s31_s19, 128  ;;  %p1394_p4 = scmp.lt.s32.totalorder %s31_s19, %s31_s19 }
   0xc   :  { %p1390_p3 = scmp.ne.s32.totalorder %s31_s19, %s1389_s29  ;;  %p1395_p5 = scmp.lt.s32.totalorder %s1389_s29, %s1389_s29 }
   0xe   :  { %p1396_p6 = por %p1395_p5, %p1394_p4 }
  0x10   :  { %p1397_p7 = pnand %p1396_p6, %p1390_p3 }
  0x12   :  { %1400 = shalt.err (!%p1397_p7)
}
  0x13   :  { %33 = dma.hbm_to_vmem [thread:$0]  %s1880_s1, 128, %s31_s19, [#allocation6]  }
  0x14   :  { %s1401_s9 = scalar_lea.hbm %s1879_s0, 64 }
  0x15   :  { %p1402_p8 = scmp.ne.s32.totalorder %s1879_s0, %s1401_s9  ;;  %p1405_p9 = scmp.lt.u32.totalorder %s1401_s9, %s1879_s0 }
  0x17   :  { %p1407_p10 = pnand %p1405_p9, %p1402_p8 }
  0x19   :  { %1410 = shalt.err (!%p1407_p10)
}
  0x1a   :  { %s1411_s14 = scalar_lea.vmem %s21_s21, 64  ;;  %p1416_p12 = scmp.lt.s32.totalorder %s21_s21, %s21_s21 }
  0x1b   :  { %p1412_p11 = scmp.ne.s32.totalorder %s21_s21, %s1411_s14  ;;  %p1417_p13 = scmp.lt.s32.totalorder %s1411_s14, %s1411_s14 }
  0x1d   :  { %p1418_p0 = por %p1417_p13, %p1416_p12 }
  0x1f   :  { %p1419_p1 = pnand %p1418_p0, %p1412_p11 }
  0x21   :  { %1422 = shalt.err (!%p1419_p1)
}
  0x22   :  { %23 = dma.hbm_to_vmem [thread:$0]  %s1879_s0, 64, %s21_s21, [#allocation3]  }
  0x23   :  { %s1499_s16 = smov [#allocation7]   ;;  %s1423_s20 = scalar_lea.hbm %s1881_s2, 256 }
  0x24   :  { %s39_s17 = sshll.u32 %s1499_s16, 4  ;;  %p1424_p2 = scmp.ne.s32.totalorder %s1881_s2, %s1423_s20  ;;  %s40_s17 = int_to_ptr.vmem [resolvable:$true] %s39_s17 }
  0x25   :  { %p1427_p3 = scmp.lt.u32.totalorder %s1423_s20, %s1881_s2 }
  0x27   :  { %p1429_p4 = pnand %p1427_p3, %p1424_p2 }
  0x29   :  { %1432 = shalt.err (!%p1429_p4)
}
  0x2a   :  { %s1433_s26 = scalar_lea.vmem %s40_s17, 256  ;;  %p1438_p6 = scmp.lt.s32.totalorder %s40_s17, %s40_s17 }
  0x2b   :  { %p1434_p5 = scmp.ne.s32.totalorder %s40_s17, %s1433_s26  ;;  %p1439_p7 = scmp.lt.s32.totalorder %s1433_s26, %s1433_s26 }
  0x2d   :  { %p1440_p8 = por %p1439_p7, %p1438_p6 }
  0x2f   :  { %p1441_p9 = pnand %p1440_p8, %p1434_p5 }
  0x31   :  { %1444 = shalt.err (!%p1441_p9)
}
  0x32   :  { %s1500_s0 = smov 128   ;;  %s1501_s21 = smov 8  }
  0x33   :  { %45 = dma.hbm_to_vmem [thread:$0]  %s1881_s2, 256, %s40_s17, [#allocation6], %s1500_s0, %s1500_s0, %s1501_s21  }
  0x34   :  { %s1502_s29 = smov [#allocation8]   ;;  %s1445_s8 = scalar_lea.hbm %s1882_s3, 256 }
  0x35   :  { %s51_s30 = sshll.u32 %s1502_s29, 4  ;;  %p1446_p10 = scmp.ne.s32.totalorder %s1882_s3, %s1445_s8  ;;  %s52_s30 = int_to_ptr.vmem [resolvable:$true] %s51_s30 }
  0x36   :  { %p1449_p11 = scmp.lt.u32.totalorder %s1445_s8, %s1882_s3 }
  0x38   :  { %p1451_p12 = pnand %p1449_p11, %p1446_p10 }
  0x3a   :  { %1454 = shalt.err (!%p1451_p12)
}
  0x3b   :  { %s1455_s13 = scalar_lea.vmem %s52_s30, 256  ;;  %p1460_p0 = scmp.lt.s32.totalorder %s52_s30, %s52_s30 }
  0x3c   :  { %p1456_p13 = scmp.ne.s32.totalorder %s52_s30, %s1455_s13  ;;  %p1461_p1 = scmp.lt.s32.totalorder %s1455_s13, %s1455_s13 }
  0x3e   :  { %p1462_p2 = por %p1461_p1, %p1460_p0 }
  0x40   :  { %p1463_p3 = pnand %p1462_p2, %p1456_p13 }
  0x42   :  { %1466 = shalt.err (!%p1463_p3)
}
  0x43   :  { %57 = dma.hbm_to_vmem [thread:$0]  %s1882_s3, 256, %s52_s30, [#allocation9], %s1500_s0, %s1500_s0, %s1501_s21  }
  0x44   :  { %1489 = dma.done.wait [#allocation3], 64  }
  0x45   :  { %1490 = vsyncadd [#allocation3], 4294967232 }
  0x46   :  { %1491 = dma.done.wait [#allocation6], 384  }
  0x47   :  { %1492 = vsyncadd [#allocation6], 4294966912 }
  0x48   :  { %1493 = dma.done.wait [#allocation9], 256  }
  0x49   :  { %1494 = vsyncadd [#allocation9], 4294967040  ;;  %v74_v0 = vlaneseq  ;;  %v1503_v1 = vmov 0.0|0.0   ;;  %vm1504_vm0 = vmmov 0   ;;  %v1505_v3 = vmov 0.0   ;;  %v1758_v29 = vld [vmem:[#allocation5] sm:$0xff] }
  0x4a   :  { %1249 = vmatprep.subr.bf16.mxu0 %v1503_v1  ;;  %1273 = vmatprep.subr.bf16.mxu1 %v1503_v1  ;;  %v1599_v7 = vld [vmem:[#allocation2] sm:$0xf]  ;;  %v1506_v14 = vmov 1.0|1.0   ;;  %v579_v31 = vld [vmem:[#allocation7] sm:$0xff]  ;;  %v672_v42 = vld [vmem:[#allocation8 + $0x8] sm:$0xff] }
  0x4b   :  { %v1588_v2 = vshrl.u32 %v74_v0, 7  ;;  %1112 = vmatprep.mubr.msk.f32.mxu0 %vm1504_vm0, %v1505_v3  ;;  %1147 = vmatprep.mubr.msk.f32.mxu1 %vm1504_vm0, %v1505_v3  ;;  %v671_v30 = vld [vmem:[#allocation8] sm:$0xff]  ;;  %v580_v43 = vld [vmem:[#allocation7 + $0x8] sm:$0xff] }
  0x4c   :  { %v756_v53 = vld [vmem:[%s1883_s4] sm:$0xff]  ;;  %s1507_s4 = smov [#allocation10]  }
  0x4d   :  { %v93_v4 = vsub.s32 0, %v1588_v2  ;;  %v215_v5 = vsub.s32 1, %v1588_v2  ;;  %v1597_v6 = vadd.s32 8, %v1588_v2  ;;  %v1602_v8 = vadd.s32 16, %v1588_v2  ;;  %s852_s15 = sshll.u32 %s1507_s4, 4  ;;  %s853_s15 = int_to_ptr.vmem [resolvable:$true] %s852_s15 }
  0x4e   :  { %v1605_v9 = vadd.s32 24, %v1588_v2  ;;  %v1614_v12 = vadd.s32 32, %v1588_v2  ;;  %v1617_v13 = vadd.s32 40, %v1588_v2  ;;  %v1644_v15 = vadd.s32 48, %v1588_v2  ;;  %s1467_s16 = scalar_lea.vmem %s853_s15, 16  ;;  %s1471_s17 = scalar_lea.vmem %s853_s15, 32 }
  0x4f   :  { %v1608_v10 = vrot.slane %v1599_v7, %v93_v4  ;;  %v1611_v11 = vrot.slane %v1599_v7, %v215_v5  ;;  %v1647_v16 = vadd.s32 56, %v1588_v2  ;;  %v1662_v17 = vadd.s32 64, %v1588_v2  ;;  %p1468_p4 = scmp.ne.s32.totalorder %s853_s15, %s1467_s16  ;;  %p1472_p5 = scmp.lt.s32.totalorder %s853_s15, %s853_s15 }
  0x50   :  { %v1665_v18 = vadd.s32 72, %v1588_v2  ;;  %v1680_v19 = vadd.s32 80, %v1588_v2  ;;  %v1683_v20 = vadd.s32 88, %v1588_v2  ;;  %v1698_v21 = vadd.s32 96, %v1588_v2  ;;  %p1473_p6 = scmp.lt.s32.totalorder %s1471_s17, %s1467_s16 }
  0x51   :  { %vm95_vm1 = vcmp.eq.s32.totalorder %v1588_v2, %v1608_v10  ;;  %vm96_vm2 = vcmp.eq.s32.totalorder %v1597_v6, %v1608_v10  ;;  %vm217_vm3 = vcmp.eq.s32.totalorder %v1588_v2, %v1611_v11  ;;  %vm218_vm4 = vcmp.eq.s32.totalorder %v1597_v6, %v1611_v11 }
  0x52   :  { %vm1250_vm5 = vmpackc.low %vm96_vm2, %vm95_vm1  ;;  %vm97_vm6 = vcmp.eq.s32.totalorder %v1602_v8, %v1608_v10  ;;  %vm98_vm7 = vcmp.eq.s32.totalorder %v1605_v9, %v1608_v10  ;;  %vm219_vm8 = vcmp.eq.s32.totalorder %v1602_v8, %v1611_v11  ;;  %vm220_vm9 = vcmp.eq.s32.totalorder %v1605_v9, %v1611_v11  ;;  %p1474_p7 = por %p1473_p6, %p1472_p5 }
  0x53   :  { %1251 = vmatpush3.bf16.msk.msra.mxu0 %vm1250_vm5, %v1506_v14  ;;  %vm1274_vm10 = vmpackc.low %vm218_vm4, %vm217_vm3  ;;  %vm99_vm13 = vcmp.eq.s32.totalorder %v1614_v12, %v1608_v10  ;;  %vm100_vm14 = vcmp.eq.s32.totalorder %v1617_v13, %v1608_v10  ;;  %vm221_vm15 = vcmp.eq.s32.totalorder %v1614_v12, %v1611_v11  ;;  %vm222_vm1 = vcmp.eq.s32.totalorder %v1617_v13, %v1611_v11 }
  0x54   :  { %1275 = vmatpush3.bf16.msk.msra.mxu1 %vm1274_vm10, %v1506_v14  ;;  %1252 = vmatprep.subr.bf16.mxu0 %v1503_v1  ;;  %vm1253_vm11 = vmpackc.low %vm98_vm7, %vm97_vm6  ;;  %vm101_vm4 = vcmp.eq.s32.totalorder %v1644_v15, %v1608_v10  ;;  %vm102_vm5 = vcmp.eq.s32.totalorder %v1647_v16, %v1608_v10  ;;  %vm223_vm6 = vcmp.eq.s32.totalorder %v1644_v15, %v1611_v11  ;;  %v1701_v22 = vadd.s32 104, %v1588_v2  ;;  %p1475_p8 = pnand %p1474_p7, %p1468_p4 }
  0x55   :  { %1276 = vmatprep.subr.bf16.mxu1 %v1503_v1  ;;  %vm1277_vm12 = vmpackc.low %vm220_vm9, %vm219_vm8  ;;  %vm224_vm7 = vcmp.eq.s32.totalorder %v1647_v16, %v1611_v11  ;;  %vm103_vm10 = vcmp.eq.s32.totalorder %v1662_v17, %v1608_v10  ;;  %v1711_v23 = vadd.s32 112, %v1588_v2  ;;  %v1719_v24 = vadd.s32 120, %v1588_v2 }
  0x56   :  { %vm1256_vm2 = vmpackc.low %vm100_vm14, %vm99_vm13  ;;  %vm226_vm13 = vcmp.eq.s32.totalorder %v1665_v18, %v1611_v11  ;;  %v337_v25 = vsub.s32 2, %v1588_v2  ;;  %v459_v26 = vsub.s32 3, %v1588_v2 }
  0x57   :  { %1254 = vmatpush3.bf16.msk.msra.mxu0 %vm1253_vm11, %v1506_v14  ;;  %vm1280_vm3 = vmpackc.low %vm222_vm1, %vm221_vm15  ;;  %vm104_vm11 = vcmp.eq.s32.totalorder %v1665_v18, %v1608_v10  ;;  %vm105_vm1 = vcmp.eq.s32.totalorder %v1680_v19, %v1608_v10 }
  0x58   :  { %1278 = vmatpush3.bf16.msk.msra.mxu1 %vm1277_vm12, %v1506_v14  ;;  %1255 = vmatprep.subr.bf16.mxu0 %v1503_v1  ;;  %vm1259_vm8 = vmpackc.low %vm102_vm5, %vm101_vm4  ;;  %vm225_vm12 = vcmp.eq.s32.totalorder %v1662_v17, %v1611_v11  ;;  %vm228_vm4 = vcmp.eq.s32.totalorder %v1683_v20, %v1611_v11  ;;  %v1736_v27 = vrot.slane %v1599_v7, %v337_v25 }
  0x59   :  { %1279 = vmatprep.subr.bf16.mxu1 %v1503_v1  ;;  %vm1283_vm9 = vmpackc.low %vm224_vm7, %vm223_vm6  ;;  %vm107_vm7 = vcmp.eq.s32.totalorder %v1698_v21, %v1608_v10  ;;  %v1743_v28 = vrot.slane %v1599_v7, %v459_v26 }
  0x5a   :  { %vm1262_vm14 = vmpackc.low %vm104_vm11, %vm103_vm10  ;;  %vm230_vm10 = vcmp.eq.s32.totalorder %v1701_v22, %v1611_v11 }
  0x5b   :  { %1257 = vmatpush3.bf16.msk.msra.mxu0 %vm1256_vm2, %v1506_v14  ;;  %vm1286_vm15 = vmpackc.low %vm226_vm13, %vm225_vm12  ;;  %vm106_vm2 = vcmp.eq.s32.totalorder %v1683_v20, %v1608_v10  ;;  %vm109_vm13 = vcmp.eq.s32.totalorder %v1711_v23, %v1608_v10 }
  0x5c   :  { %1281 = vmatpush3.bf16.msk.msra.mxu1 %vm1280_vm3, %v1506_v14  ;;  %1258 = vmatprep.subr.bf16.mxu0 %v1503_v1  ;;  %vm227_vm3 = vcmp.eq.s32.totalorder %v1680_v19, %v1611_v11  ;;  %vm1265_vm5 = vmpackc.low %vm106_vm2, %vm105_vm1  ;;  %vm232_vm1 = vcmp.eq.s32.totalorder %v1719_v24, %v1611_v11 }
  0x5d   :  { %1282 = vmatprep.subr.bf16.mxu1 %v1503_v1  ;;  %vm1289_vm6 = vmpackc.low %vm228_vm4, %vm227_vm3  ;;  %vm339_vm4 = vcmp.eq.s32.totalorder %v1588_v2, %v1736_v27 }
  0x5f   :  { %1260 = vmatpush3.bf16.msk.msra.mxu0 %vm1259_vm8, %v1506_v14  ;;  %vm108_vm8 = vcmp.eq.s32.totalorder %v1701_v22, %v1608_v10 }
  0x60   :  { %1284 = vmatpush3.bf16.msk.msra.mxu1 %vm1283_vm9, %v1506_v14  ;;  %1261 = vmatprep.subr.bf16.mxu0 %v1503_v1  ;;  %vm229_vm9 = vcmp.eq.s32.totalorder %v1698_v21, %v1611_v11  ;;  %vm1268_vm11 = vmpackc.low %vm108_vm8, %vm107_vm7  ;;  %vm462_vm7 = vcmp.eq.s32.totalorder %v1597_v6, %v1743_v28 }
  0x61   :  { %1285 = vmatprep.subr.bf16.mxu1 %v1503_v1  ;;  %vm1292_vm12 = vmpackc.low %vm230_vm10, %vm229_vm9  ;;  %vm341_vm10 = vcmp.eq.s32.totalorder %v1602_v8, %v1736_v27 }
  0x63   :  { %1263 = vmatpush3.bf16.msk.msra.mxu0 %vm1262_vm14, %v1506_v14  ;;  %vm110_vm14 = vcmp.eq.s32.totalorder %v1719_v24, %v1608_v10 }
  0x64   :  { %1287 = vmatpush3.bf16.msk.msra.mxu1 %vm1286_vm15, %v1506_v14  ;;  %1264 = vmatprep.subr.bf16.mxu0 %v1503_v1  ;;  %vm231_vm15 = vcmp.eq.s32.totalorder %v1711_v23, %v1611_v11  ;;  %vm1271_vm2 = vmpackc.low %vm110_vm14, %vm109_vm13  ;;  %vm464_vm13 = vcmp.eq.s32.totalorder %v1605_v9, %v1743_v28 }
  0x65   :  { %1288 = vmatprep.subr.bf16.mxu1 %v1503_v1  ;;  %vm1295_vm3 = vmpackc.low %vm232_vm1, %vm231_vm15  ;;  %vm343_vm1 = vcmp.eq.s32.totalorder %v1614_v12, %v1736_v27 }
  0x67   :  { %1266 = vmatpush3.bf16.msk.msra.mxu0 %vm1265_vm5, %v1506_v14  ;;  %vm340_vm5 = vcmp.eq.s32.totalorder %v1597_v6, %v1736_v27 }
  0x68   :  { %1290 = vmatpush3.bf16.msk.msra.mxu1 %vm1289_vm6, %v1506_v14  ;;  %1267 = vmatprep.subr.bf16.mxu0 %v1503_v1  ;;  %vm461_vm6 = vcmp.eq.s32.totalorder %v1588_v2, %v1743_v28  ;;  %vm1298_vm8 = vmpackc.low %vm340_vm5, %vm339_vm4  ;;  %vm466_vm4 = vcmp.eq.s32.totalorder %v1617_v13, %v1743_v28 }
  0x69   :  { %1291 = vmatprep.subr.bf16.mxu1 %v1503_v1  ;;  %vm1322_vm9 = vmpackc.low %vm462_vm7, %vm461_vm6  ;;  %vm345_vm7 = vcmp.eq.s32.totalorder %v1644_v15, %v1736_v27 }
  0x6b   :  { %1269 = vmatpush3.bf16.msk.msra.mxu0 %vm1268_vm11, %v1506_v14  ;;  %vm342_vm11 = vcmp.eq.s32.totalorder %v1605_v9, %v1736_v27 }
  0x6c   :  { %1293 = vmatpush3.bf16.msk.msra.mxu1 %vm1292_vm12, %v1506_v14  ;;  %1270 = vmatprep.subr.bf16.mxu0 %v1503_v1  ;;  %vm463_vm12 = vcmp.eq.s32.totalorder %v1602_v8, %v1743_v28  ;;  %vm1301_vm14 = vmpackc.low %vm342_vm11, %vm341_vm10  ;;  %vm468_vm10 = vcmp.eq.s32.totalorder %v1647_v16, %v1743_v28 }
  0x6d   :  { %1294 = vmatprep.subr.bf16.mxu1 %v1503_v1  ;;  %vm1325_vm15 = vmpackc.low %vm464_vm13, %vm463_vm12  ;;  %vm347_vm13 = vcmp.eq.s32.totalorder %v1662_v17, %v1736_v27 }
  0x6f   :  { %1272 = vmatpush3.bf16.msk.msra.mxu0 %vm1271_vm2, %v1506_v14  ;;  %vm344_vm2 = vcmp.eq.s32.totalorder %v1617_v13, %v1736_v27 }
  0x70   :  { %1296 = vmatpush3.bf16.msk.msra.mxu1 %vm1295_vm3, %v1506_v14  ;;  %1297 = vmatprep.subr.bf16.mxu0 %v1503_v1  ;;  %vm465_vm3 = vcmp.eq.s32.totalorder %v1614_v12, %v1743_v28  ;;  %vm1304_vm5 = vmpackc.low %vm344_vm2, %vm343_vm1  ;;  %vm470_vm1 = vcmp.eq.s32.totalorder %v1665_v18, %v1743_v28 }
  0x71   :  { %1321 = vmatprep.subr.bf16.mxu1 %v1503_v1  ;;  %vm1328_vm6 = vmpackc.low %vm466_vm4, %vm465_vm3  ;;  %vm349_vm4 = vcmp.eq.s32.totalorder %v1680_v19, %v1736_v27 }
  0x72   :  { %1113 = vmatmul.mubr.f32.vlgmr.msra.gmra.mrb[0].mxu0 %v1758_v29 }
  0x73   :  { %1148 = vmatmul.mubr.f32.vlgmr.msra.gmra.mrb[0].mxu1 %v1758_v29  ;;  %1299 = vmatpush3.bf16.msk.msra.mxu0 %vm1298_vm8, %v1506_v14  ;;  %vm346_vm8 = vcmp.eq.s32.totalorder %v1647_v16, %v1736_v27 }
  0x74   :  { %1323 = vmatpush3.bf16.msk.msra.mxu1 %vm1322_vm9, %v1506_v14  ;;  %1300 = vmatprep.subr.bf16.mxu0 %v1503_v1  ;;  %vm467_vm9 = vcmp.eq.s32.totalorder %v1644_v15, %v1743_v28  ;;  %vm1307_vm11 = vmpackc.low %vm346_vm8, %vm345_vm7  ;;  %vm472_vm7 = vcmp.eq.s32.totalorder %v1683_v20, %v1743_v28 }
  0x75   :  { %1324 = vmatprep.subr.bf16.mxu1 %v1503_v1  ;;  %1182 = vmatprep.mubr.msk.f32.mxu0 %vm1504_vm0, %v1505_v3  ;;  %vm1331_vm12 = vmpackc.low %vm468_vm10, %vm467_vm9  ;;  %vm351_vm10 = vcmp.eq.s32.totalorder %v1698_v21, %v1736_v27 }
  0x76   :  { %1217 = vmatprep.mubr.msk.f32.mxu1 %vm1504_vm0, %v1505_v3 }
  0x77   :  { %1302 = vmatpush3.bf16.msk.msra.mxu0 %vm1301_vm14, %v1506_v14  ;;  %vm348_vm14 = vcmp.eq.s32.totalorder %v1665_v18, %v1736_v27 }
  0x78   :  { %1326 = vmatpush3.bf16.msk.msra.mxu1 %vm1325_vm15, %v1506_v14  ;;  %1303 = vmatprep.subr.bf16.mxu0 %v1503_v1  ;;  %vm469_vm15 = vcmp.eq.s32.totalorder %v1662_v17, %v1743_v28  ;;  %vm1310_vm2 = vmpackc.low %vm348_vm14, %vm347_vm13  ;;  %vm474_vm13 = vcmp.eq.s32.totalorder %v1701_v22, %v1743_v28 }
  0x79   :  { %1327 = vmatprep.subr.bf16.mxu1 %v1503_v1  ;;  %vm1334_vm3 = vmpackc.low %vm470_vm1, %vm469_vm15  ;;  %vm353_vm1 = vcmp.eq.s32.totalorder %v1711_v23, %v1736_v27 }
  0x7b   :  { %1305 = vmatpush3.bf16.msk.msra.mxu0 %vm1304_vm5, %v1506_v14  ;;  %vm350_vm5 = vcmp.eq.s32.totalorder %v1683_v20, %v1736_v27 }
  0x7c   :  { %1329 = vmatpush3.bf16.msk.msra.mxu1 %vm1328_vm6, %v1506_v14  ;;  %1306 = vmatprep.subr.bf16.mxu0 %v1503_v1  ;;  %vm471_vm6 = vcmp.eq.s32.totalorder %v1680_v19, %v1743_v28  ;;  %vm1313_vm8 = vmpackc.low %vm350_vm5, %vm349_vm4  ;;  %vm476_vm4 = vcmp.eq.s32.totalorder %v1719_v24, %v1743_v28 }
  0x7d   :  { %1330 = vmatprep.subr.bf16.mxu1 %v1503_v1  ;;  %vm1337_vm9 = vmpackc.low %vm472_vm7, %vm471_vm6  ;;  %vm581_vm7 = vcmask 261120  }
  0x7f   :  { %1308 = vmatpush3.bf16.msk.msra.mxu0 %vm1307_vm11, %v1506_v14  ;;  %vm352_vm11 = vcmp.eq.s32.totalorder %v1701_v22, %v1736_v27 }
  0x80   :  { %1332 = vmatpush3.bf16.msk.msra.mxu1 %vm1331_vm12, %v1506_v14  ;;  %1309 = vmatprep.subr.bf16.mxu0 %v1503_v1  ;;  %vm473_vm12 = vcmp.eq.s32.totalorder %v1698_v21, %v1743_v28  ;;  %vm1316_vm14 = vmpackc.low %vm352_vm11, %vm351_vm10 }
  0x81   :  { %1333 = vmatprep.subr.bf16.mxu1 %v1503_v1  ;;  %vm1340_vm15 = vmpackc.low %vm474_vm13, %vm473_vm12 }
  0x83   :  { %1311 = vmatpush3.bf16.msk.msra.mxu0 %vm1310_vm2, %v1506_v14  ;;  %vm354_vm2 = vcmp.eq.s32.totalorder %v1719_v24, %v1736_v27 }
  0x84   :  { %1335 = vmatpush3.bf16.msk.msra.mxu1 %vm1334_vm3, %v1506_v14  ;;  %1312 = vmatprep.subr.bf16.mxu0 %v1503_v1  ;;  %vm475_vm3 = vcmp.eq.s32.totalorder %v1711_v23, %v1743_v28  ;;  %vm1319_vm5 = vmpackc.low %vm354_vm2, %vm353_vm1 }
  0x85   :  { %1336 = vmatprep.subr.bf16.mxu1 %v1503_v1  ;;  %vm1343_vm6 = vmpackc.low %vm476_vm4, %vm475_vm3 }
  0x87   :  { %1314 = vmatpush3.bf16.msk.msra.mxu0 %vm1313_vm8, %v1506_v14  ;;  %vm757_vm8 = vcmask 130048  }
  0x88   :  { %1338 = vmatpush3.bf16.msk.msra.mxu1 %vm1337_vm9, %v1506_v14  ;;  %1315 = vmatprep.subr.bf16.mxu0 %v1503_v1 }
  0x89   :  { %1339 = vmatprep.subr.bf16.mxu1 %v1503_v1 }
  0x8b   :  { %1317 = vmatpush3.bf16.msk.msra.mxu0 %vm1316_vm14, %v1506_v14 }
  0x8c   :  { %1341 = vmatpush3.bf16.msk.msra.mxu1 %vm1340_vm15, %v1506_v14  ;;  %1318 = vmatprep.subr.bf16.mxu0 %v1503_v1 }
  0x8d   :  { %1342 = vmatprep.subr.bf16.mxu1 %v1503_v1 }
  0x8f   :  { %1320 = vmatpush3.bf16.msk.msra.mxu0 %vm1319_vm5, %v1506_v14 }
  0x90   :  { %1344 = vmatpush3.bf16.msk.msra.mxu1 %vm1343_vm6, %v1506_v14 }
  0x92   :  { %1183 = vmatmul.mubr.f32.vlgmr.msra.gmra.mrb[2].mxu0 %v1758_v29 }
  0x93   :  { %1218 = vmatmul.mubr.f32.vlgmr.msra.gmra.mrb[2].mxu1 %v1758_v29  ;;  %1228 = vmatprep.mubr.msk.f32.mxu0 %vm581_vm7, %v579_v31 }
  0x94   :  { %1239 = vmatprep.mubr.msk.f32.mxu1 %vm581_vm7, %v671_v30 }
 0x145   :  { %v209_v32 = vpop.f32.mrb[0].mxu0 }
 0x146   :  { %v331_v33 = vpop.f32.mrb[0].mxu1  ;;  %v1114_v34 = vpop.f32.mrb[1].mxu0 }
 0x147   :  { %v1345_v35 = vpack.c.bf16 %v331_v33, %v209_v32  ;;  %v1149_v36 = vpop.f32.mrb[1].mxu1 }
 0x149   :  { %1346 = vmatprep.subr.bf16.mxu0 %v1345_v35  ;;  %1354 = vmatprep.subr.bf16.mxu1 %v1345_v35 }
 0x14a   :  { %1348 = vmatpush3.bf16.msra.mxu0 %v1345_v35  ;;  %1356 = vmatpush3.bf16.msra.mxu1 %v1345_v35 }
 0x165   :  { %v453_v37 = vpop.f32.mrb[2].mxu0 }
 0x166   :  { %v575_v38 = vpop.f32.mrb[2].mxu1  ;;  %v1184_v39 = vpop.f32.mrb[3].mxu0 }
 0x167   :  { %v1349_v40 = vpack.c.bf16 %v575_v38, %v453_v37  ;;  %v1219_v41 = vpop.f32.mrb[3].mxu1 }
 0x169   :  { %1350 = vmatprep.subr.bf16.mxu0 %v1349_v40  ;;  %1358 = vmatprep.subr.bf16.mxu1 %v1349_v40 }
 0x16a   :  { %1352 = vmatpush3.bf16.msra.mxu0 %v1349_v40  ;;  %1360 = vmatpush3.bf16.msra.mxu1 %v1349_v40 }
 0x16b   :  { %1361 = vmatprep.subr.bf16.mxu0 %v1503_v1 }
 0x16d   :  { %1240 = vmatmul.mubr.msk.f32.vlgmr.msra.gmra.mrb[4].mxu1 %vm581_vm7, %v672_v42  ;;  %1229 = vmatmul.mubr.msk.f32.vlgmr.msra.gmra.mrb[4].mxu0 %vm581_vm7, %v580_v43 }
 0x16e   :  { %1246 = vmatprep.mubr.msk.f32.mxu0 %vm1504_vm0, %v1505_v3 }
 0x240   :  { %v1241_v44 = vpop.f32.mrb[4].mxu1  ;;  %v1230_v45 = vpop.f32.mrb[4].mxu0 }
 0x241   :  { %v755_v46 = vmax.f32 %v1241_v44, 0.0  ;;  %v745_v47 = vpop.f32.mrb[5].mxu1  ;;  %v663_v48 = vmul.f32 %v1230_v45, %v1230_v45  ;;  %v654_v49 = vpop.f32.mrb[5].mxu0 }
 0x242   :  { %v754_v50 = vmax.f32 %v745_v47, 0.0 }
 0x243   :  { %v664_v51 = vadd.f32 %v663_v48, %v654_v49 }
 0x244   :  { %v1362_v52 = vpack.c.bf16 %v755_v46, %v754_v50 }
 0x245   :  { %v665_v54 = vrot.slane %v664_v51, 4 }
 0x246   :  { %1363 = vmatpush3.bf16.msra.mxu0 %v1362_v52 }
 0x247   :  { %v666_v55 = vadd.f32 %v665_v54, %v664_v51 }
 0x249   :  { %1247 = vmatmul.mubr.msk.f32.vlgmr.msra.gmra.mrb[6].mxu0 %vm757_vm8, %v756_v53  ;;  %v667_v57 = vrot.slane %v666_v55, 2 }
 0x24b   :  { %v668_v61 = vadd.f32 %v667_v57, %v666_v55 }
 0x24d   :  { %v669_v0 = vrot.slane %v668_v61, 1 }
 0x24f   :  { %v670_v3 = vadd.f32 %v669_v0, %v668_v61 }
 0x31c   :  { %v827_v56 = vpop.f32.mrb[6].mxu0 }
 0x31d   :  { %v831_v58 = vmax.f32 %v827_v56, 0.0  ;;  %v1248_v59 = vpop.f32.mrb[7].mxu0 }
 0x31f   :  { %v832_v60 = vrot.slane %v831_v58, 4 }
 0x321   :  { %v833_v62 = vadd.f32 %v832_v60, %v831_v58 }
 0x323   :  { %v834_v63 = vrot.slane %v833_v62, 2 }
 0x325   :  { %v835_v1 = vadd.f32 %v834_v63, %v833_v62 }
 0x327   :  { %v836_v2 = vrot.slane %v835_v1, 1 }
 0x329   :  { %v837_v4 = vadd.f32 %v836_v2, %v835_v1 }
 0x32b   :  { %v838_v5 = vadd.f32 %v837_v4, %v670_v3 }
 0x32d   :  { %v996_v6 = vmul.f32 -1.442695, %v838_v5 }
 0x32f   :  { %1375 = vpow2.f32 %v996_v6 }
 0x339   :  { %v1376_v7 = vpop.eup %1375 }
 0x33a   :  { %v842_v8 = vadd.f32 1.0, %v1376_v7 }
 0x33c   :  { %1377 = vrcp.f32 %v842_v8 }
 0x346   :  { %v1378_v9 = vpop.eup %1377 }
 0x347   :  { %845 = vst [vmem:[#allocation10] sm:$0x1] %v1378_v9 }
 0x348   :  { %1478 = shalt.err (!%p1475_p8)
}
 0x349   :  { %s1479_s20 = scalar_lea.hbm %s1884_s5, 16 }
 0x34a   :  { %p1480_p9 = scmp.ne.s32.totalorder %s1884_s5, %s1479_s20  ;;  %p1483_p10 = scmp.lt.u32.totalorder %s1479_s20, %s1884_s5 }
 0x34c   :  { %p1485_p11 = pnand %p1483_p10, %p1480_p9 }
 0x34e   :  { %1488 = shalt.err (!%p1485_p11)
}
 0x34f   :  { %855 = dma.vmem_to_hbm [thread:$0]  %s853_s15, 16, %s1884_s5, [#allocation4]  }
 0x350   :  { %1495 = dma.done.wait [#allocation4], 16  }
 0x351   :  { %1496 = vsyncadd [#allocation4], 4294967280 }
 0x352   :  { %859 = vsyncpa [#allocation3], 1 }
 0x353   :  { %860 = vsyncpa [#allocation6], 1 }
 0x354   :  { %861 = vsyncpa [#allocation9], 1 }
 0x355   :  { %862 = vsyncpa [#allocation4], 1 }

</bundles_post_ra>
